<compile_context>
chip_gen: v7x
topology: tpu7x:2x2x1
jax: 0.10.0
libtpu: 0.0.40
codegen_flags: <defaults>
</compile_context>

<pallas_src>
import numpy as np
import jax
import jax.numpy as jnp
from jax.experimental import pallas as pl
from jax.experimental.pallas import tpu as pltpu

_MIN_GRID_STEPS = 4  # keep the parallel axis shardable across v7x's 2 TCs


def _fill_padded(x_ref, xpad_ref, H, W):
    """Zero only the 1-px halo and copy channel-0 into the scratch interior."""
    Nb = xpad_ref.shape[0]
    dt = xpad_ref.dtype
    # top / bottom halo rows
    zrow = jnp.zeros((Nb, 1, W + 2), dt)
    xpad_ref[:, 0:1, :] = zrow
    xpad_ref[:, H + 1:H + 2, :] = zrow
    # left / right halo columns
    zcol = jnp.zeros((Nb, H + 2, 1), dt)
    xpad_ref[:, :, 0:1] = zcol
    xpad_ref[:, :, W + 1:W + 2] = zcol
    # interior (overwrites everything except the halo)
    xpad_ref[:, 1:H + 1, 1:W + 1] = x_ref[:, 0, :, :].astype(dt)


def _dilate_ones_kernel(x_ref, o_ref, xpad_ref):
    # Specialized path: weight is statically all-ones (the actual module).
    # x_ref   : (Nb, 1, H, W) VMEM (channel-0 tile; slice fused into the DMA)
    # o_ref   : (Nb, H, W)    VMEM
    # xpad_ref: (Nb, H+2, W+2) f32 VMEM scratch (zero-padded slab)
    Nb, H, W = o_ref.shape
    _fill_padded(x_ref, xpad_ref, H, W)

    # Horizontal partial sums per padded row (3 statically-offset ref loads),
    # then vertical sum of 3 consecutive row sums: ~4 adds/element total.
    row_sum = (xpad_ref[:, :, 0:W]
               + xpad_ref[:, :, 1:W + 1]
               + xpad_ref[:, :, 2:W + 2])              # (Nb, H+2, W)
    o_ref[...] = (row_sum[:, 0:H, :]
                  + row_sum[:, 1:H + 1, :]
                  + row_sum[:, 2:H + 2, :]).astype(o_ref.dtype)


def _dilate_generic_kernel(w_ref, x_ref, o_ref, xpad_ref):
    # Generic 3x3 correlation fallback (arbitrary weights).
    # w_ref: (3, 3) f32 in SMEM (scalar taps).
    Nb, H, W = o_ref.shape
    _fill_padded(x_ref, xpad_ref, H, W)

    # Hoist the 9 scalar taps (cheap SMEM reads) out of the unrolled loop.
    w = [[w_ref[i, j] for j in range(3)] for i in range(3)]

    acc = w[0][0] * xpad_ref[:, 0:H, 0:W]
    for dh in range(3):
        for dw in range(3):
            if dh == 0 and dw == 0:
                continue
            acc = acc + w[dh][dw] * xpad_ref[:, dh:dh + H, dw:dw + W]
    o_ref[...] = acc.astype(o_ref.dtype)


def _vmem_capacity_bytes():
    try:
        return int(pltpu.get_tpu_info().vmem_capacity_bytes)
    except Exception:
        return 64 * 1024 * 1024  # conservative (v7x per-TC VMEM)


def dilate_forward(x, weight=None, *, vmem_budget_bytes=None):
    """x: (N, C, H, W); weight: (3, 3) (defaults to the module's all-ones).

    Returns (N, 1, H, W) = F.conv2d(x[:, :1], weight, padding=1).
    """
    N, C, H, W = x.shape

    vmem_cap = _vmem_capacity_bytes()
    if vmem_budget_bytes is None:
        # Generation-aware default; multi-MiB blocks already hit >85% of the
        # HBM roofline, and this stays safe on v7x's 64 MiB VMEM.
        vmem_budget_bytes = min(32 * 1024 * 1024, vmem_cap // 2)

    # Is the weight statically all-ones (the actual `dilate` module)?
    use_ones = weight is None
    if not use_ones:
        try:
            w_host = np.asarray(weight)
            use_ones = (w_host.shape == (3, 3)) and bool(np.all(w_host == 1.0))
        except Exception:  # traced / abstract weight -> generic path
            use_ones = False

    # Per-image VMEM footprint: double-buffered 1-channel input block,
    # double-buffered output block, single-buffered f32 padded scratch.
    itemsize = jnp.dtype(x.dtype).itemsize
    per_img = itemsize * 4 * H * W + 4 * (H + 2) * (W + 2)
    nb = max(1, min(N, vmem_budget_bytes // max(per_img, 1)))
    # Never collapse to one grid step: keep >= _MIN_GRID_STEPS steps when N
    # permits (v7x megacore sharding + DMA/compute overlap).
    nb = min(nb, max(1, N // _MIN_GRID_STEPS))
    while N % nb:
        nb -= 1
    grid = (N // nb,)

    # Tell the compiler about the budget (with headroom for pipeline temps).
    vmem_limit = int(min(max(vmem_budget_bytes + (8 << 20), 16 << 20),
                         3 * vmem_cap // 4))
    compiler_params = pltpu.CompilerParams(
        dimension_semantics=("parallel",),
        vmem_limit_bytes=vmem_limit)

    in_block = pl.BlockSpec((nb, 1, H, W), lambda b: (b, 0, 0, 0))
    out_block = pl.BlockSpec((nb, H, W), lambda b: (b, 0, 0))
    scratch = [pltpu.VMEM((nb, H + 2, W + 2), jnp.float32)]
    out_shape = jax.ShapeDtypeStruct((N, H, W), x.dtype)

    if use_ones:
        out = pl.pallas_call(
            _dilate_ones_kernel,
            out_shape=out_shape,
            grid=grid,
            in_specs=[in_block],
            out_specs=out_block,
            scratch_shapes=scratch,
            compiler_params=compiler_params,
        )(x)
    else:
        out = pl.pallas_call(
            _dilate_generic_kernel,
            out_shape=out_shape,
            grid=grid,
            in_specs=[pl.BlockSpec(memory_space=pltpu.MemorySpace.SMEM),
                      in_block],
            out_specs=out_block,
            scratch_shapes=scratch,
            compiler_params=compiler_params,
        )(jnp.asarray(weight, jnp.float32), x)

    # Re-insert the singleton channel dim (metadata-only reshape).
    return out.reshape(N, 1, H, W)


def dilate_reference(x, weight):
    """Pure-JAX reference: F.conv2d(x[:, :1], 3x3 weight, padding=1)."""
    x1 = x[:, 0:1, :, :].astype(jnp.float32)
    w = jnp.asarray(weight, jnp.float32).reshape(1, 1, 3, 3)
    return jax.lax.conv_general_dilated(
        x1, w, window_strides=(1, 1), padding=((1, 1), (1, 1)),
        dimension_numbers=("NCHW", "OIHW", "NCHW"))


if __name__ == "__main__":
    key = jax.random.PRNGKey(0)
    x = jax.random.normal(key, (2, 4, 16, 16), dtype=jnp.float32)

    # Module's actual parameter: 3x3 all-ones (non-trainable) -> specialized path.
    weight = jnp.ones((3, 3), dtype=jnp.float32)
    out = jax.block_until_ready(dilate_forward(x, weight))
    ref = jax.block_until_ready(dilate_reference(x, weight))
    assert out.shape == (2, 1, 16, 16)
    assert jnp.allclose(out, ref, atol=1e-5, rtol=1e-5)

    # Also exercise the generic 9-tap fallback (arbitrary 3x3 weight).
    w2 = jnp.arange(9, dtype=jnp.float32).reshape(3, 3) * 0.25 - 1.0
    out2 = jax.block_until_ready(dilate_forward(x, w2))
    ref2 = jax.block_until_ready(dilate_reference(x, w2))
    assert jnp.allclose(out2, ref2, atol=1e-4, rtol=1e-4)

    print("KERNEL_OK")
</pallas_src>

<mosaic_0001>
module attributes {stable_mosaic.version = 11 : i64} {
  func.func @_dilate_ones_kernel(%arg0: i32, %arg1: memref<1x1x16x16xf32, #tpu.memory_space<vmem>>, %arg2: memref<1x16x16xf32, #tpu.memory_space<vmem>>, %arg3: memref<1x18x18xf32, #tpu.memory_space<vmem>>) attributes {dimension_semantics = [#tpu.dimension_semantics<parallel>], iteration_bounds = array<i64: 2>, scalar_prefetch = 0 : i64, scratch_operands = 1 : i64, tpu.core_type = #tpu.core_type<tc>, window_params = [{transform_indices = @transform_0, window_bounds = array<i64: 1, 1, 16, 16>}, {transform_indices = @transform_1, window_bounds = array<i64: 1, 16, 16>}]} {
    %cst = arith.constant 0.000000e+00 : f32
    %0 = vector.broadcast %cst : f32 to vector<1x1x18xf32>
    %c0 = arith.constant 0 : index
    %c0_0 = arith.constant 0 : index
    %c0_1 = arith.constant 0 : index
    %1 = vector.load %arg3[%c0, %c0_0, %c0_1] : memref<1x18x18xf32, #tpu.memory_space<vmem>>, vector<1x1x18xf32>
    tpu.vector_store %arg3[%c0, %c0_0, %c0_1], %0 {strides = array<i32>} : memref<1x18x18xf32, #tpu.memory_space<vmem>>, vector<1x1x18xf32>,
    %c0_2 = arith.constant 0 : index
    %c17 = arith.constant 17 : index
    %c0_3 = arith.constant 0 : index
    %2 = vector.load %arg3[%c0_2, %c17, %c0_3] : memref<1x18x18xf32, #tpu.memory_space<vmem>>, vector<1x1x18xf32>
    tpu.vector_store %arg3[%c0_2, %c17, %c0_3], %0 {strides = array<i32>} : memref<1x18x18xf32, #tpu.memory_space<vmem>>, vector<1x1x18xf32>,
    %cst_4 = arith.constant 0.000000e+00 : f32
    %3 = vector.broadcast %cst_4 : f32 to vector<1x18x1xf32>
    %c0_5 = arith.constant 0 : index
    %c0_6 = arith.constant 0 : index
    %c0_7 = arith.constant 0 : index
    %4 = vector.load %arg3[%c0_5, %c0_6, %c0_7] : memref<1x18x18xf32, #tpu.memory_space<vmem>>, vector<1x18x1xf32>
    tpu.vector_store %arg3[%c0_5, %c0_6, %c0_7], %3 {strides = array<i32>} : memref<1x18x18xf32, #tpu.memory_space<vmem>>, vector<1x18x1xf32>,
    %c0_8 = arith.constant 0 : index
    %c0_9 = arith.constant 0 : index
    %c17_10 = arith.constant 17 : index
    %5 = vector.load %arg3[%c0_8, %c0_9, %c17_10] : memref<1x18x18xf32, #tpu.memory_space<vmem>>, vector<1x18x1xf32>
    tpu.vector_store %arg3[%c0_8, %c0_9, %c17_10], %3 {strides = array<i32>} : memref<1x18x18xf32, #tpu.memory_space<vmem>>, vector<1x18x1xf32>,
    %c0_11 = arith.constant 0 : index
    %c0_12 = arith.constant 0 : index
    %c0_13 = arith.constant 0 : index
    %c0_14 = arith.constant 0 : index
    %6 = vector.load %arg1[%c0_11, %c0_12, %c0_13, %c0_14] : memref<1x1x16x16xf32, #tpu.memory_space<vmem>>, vector<1x1x16x16xf32>
    %7 = vector.shape_cast %6 : vector<1x1x16x16xf32> to vector<1x16x16xf32>
    %c0_15 = arith.constant 0 : index
    %c1 = arith.constant 1 : index
    %c1_16 = arith.constant 1 : index
    %8 = vector.load %arg3[%c0_15, %c1, %c1_16] : memref<1x18x18xf32, #tpu.memory_space<vmem>>, vector<1x16x16xf32>
    tpu.vector_store %arg3[%c0_15, %c1, %c1_16], %7 {strides = array<i32>} : memref<1x18x18xf32, #tpu.memory_space<vmem>>, vector<1x16x16xf32>,
    %c0_17 = arith.constant 0 : index
    %c0_18 = arith.constant 0 : index
    %c0_19 = arith.constant 0 : index
    %9 = vector.load %arg3[%c0_17, %c0_18, %c0_19] : memref<1x18x18xf32, #tpu.memory_space<vmem>>, vector<1x18x16xf32>
    %c0_20 = arith.constant 0 : index
    %c0_21 = arith.constant 0 : index
    %c1_22 = arith.constant 1 : index
    %10 = vector.load %arg3[%c0_20, %c0_21, %c1_22] : memref<1x18x18xf32, #tpu.memory_space<vmem>>, vector<1x18x16xf32>
    %11 = arith.addf %9, %10 : vector<1x18x16xf32>
    %c0_23 = arith.constant 0 : index
    %c0_24 = arith.constant 0 : index
    %c2 = arith.constant 2 : index
    %12 = vector.load %arg3[%c0_23, %c0_24, %c2] : memref<1x18x18xf32, #tpu.memory_space<vmem>>, vector<1x18x16xf32>
    %13 = arith.addf %11, %12 : vector<1x18x16xf32>
    %14 = vector.extract_strided_slice %13 {offsets = [0, 0, 0], sizes = [1, 16, 16], strides = [1, 1, 1]} : vector<1x18x16xf32> to vector<1x16x16xf32>
    %15 = vector.extract_strided_slice %13 {offsets = [0, 1, 0], sizes = [1, 16, 16], strides = [1, 1, 1]} : vector<1x18x16xf32> to vector<1x16x16xf32>
    %16 = arith.addf %14, %15 : vector<1x16x16xf32>
    %17 = vector.extract_strided_slice %13 {offsets = [0, 2, 0], sizes = [1, 16, 16], strides = [1, 1, 1]} : vector<1x18x16xf32> to vector<1x16x16xf32>
    %18 = arith.addf %16, %17 : vector<1x16x16xf32>
    %c0_25 = arith.constant 0 : index
    %c0_26 = arith.constant 0 : index
    %c0_27 = arith.constant 0 : index
    %19 = vector.load %arg2[%c0_25, %c0_26, %c0_27] : memref<1x16x16xf32, #tpu.memory_space<vmem>>, vector<1x16x16xf32>
    tpu.vector_store %arg2[%c0_25, %c0_26, %c0_27], %18 {strides = array<i32>} : memref<1x16x16xf32, #tpu.memory_space<vmem>>, vector<1x16x16xf32>,
    return
  }
  func.func @transform_0(%arg0: i32) -> (i32, i32, i32, i32) {
    %c0_i32 = arith.constant 0 : i32
    %c0_i32_0 = arith.constant 0 : i32
    %c0_i32_1 = arith.constant 0 : i32
    %c0_i32_2 = arith.constant 0 : i32
    return %arg0, %c0_i32, %c0_i32_0, %c0_i32_1 : i32, i32, i32, i32
  }
  func.func @transform_1(%arg0: i32) -> (i32, i32, i32) {
    %c0_i32 = arith.constant 0 : i32
    %c0_i32_0 = arith.constant 0 : i32
    %c0_i32_1 = arith.constant 0 : i32
    return %arg0, %c0_i32, %c0_i32_0 : i32, i32, i32
  }
}

</mosaic_0001>

<bundles_post_ra>
// kernel: tpu_custom_call.1
= control target key start
LH: loop header
LB: loop body
LE: loop exit
PB: predicated region body
PF: predicated region fallthrough
CT: control target
= control target key end

     0   :  { %6 = vsyncpa [#allocation4], 0  ;;  %s662_s0 = inlined_call_operand.hbm [shape: f32[2,4,16,16], index: 0, kind: input, shape index: {}]   ;;  %s663_s1 = inlined_call_operand.hbm [shape: f32[2,16,16], index: 1, kind: output, shape index: {}]  }
   0x1   :  { %8 = vsyncpa [#allocation4 + $0x1], 0 }
   0x2   :  { %9 = vsyncpa [#allocation5], 0 }
   0x3   :  { %11 = vsyncpa [#allocation5 + $0x1], 0  ;;  %s492_s6 = smov 0   ;;  %s494_s7 = smov 0  }
   0x4   :  { %s496_s8 = smov 0   ;;  %s498_s9 = smov 0  }
   0x5 LB: > { %s513_s10 = sadd.s32 4294967295, %s470_s9   ;;  %s304_s11 = sadd.s32 4294967294, %s470_s9   ;;  %s470_s9 = sphi %s498_s9, %s676_s9   ;;  %s466_s8 = sphi %s496_s8, %s675_s8   ;;  %s462_s7 = sphi %s494_s7, %s674_s7   ;;  %s458_s6 = sphi %s492_s6, %s673_s6  }
   0x6   : > { %s517_s12 = sadd.s32 1, %s470_s9   ;;  %s24_s13 = sadd.s32 1, %s466_s8 }
   0x7   : > { %s21_s14 = ssub.s32 %s470_s9, %s517_s12  ;;  %p31_p0 = scmp.ne.s32.totalorder %s466_s8, %s462_s7 }
   0x8   : > { %p22_p1 = scmp.eq.s32.totalorder %s21_s14, 0  ;;  %p32_p2 = scmp.eq.s32.totalorder %s470_s9, 0 }
   0x9   : > { %p37_p3 = scmp.ne.s32.totalorder %s462_s7, %s458_s6  ;;  %p38_p4 = scmp.eq.s32.totalorder %s513_s10, 0 }
   0xa   : > { %s529_s15 = scalar_select %p22_p1, %s466_s8, %s24_s13  }
   0xb   : > { %p531_p5 = por %p32_p2, %p31_p0  ;;  %p535_p6 = por %p38_p4, %p37_p3 }
   0xc   : > { %p61_p7 = scmp.eq.s32.totalorder %s513_s10, 1  ;;  %p67_p8 = scmp.eq.s32.totalorder %s304_s11, 1 }
   0xd   : > { %p332_p10 = scmp.lt.s32.totalorder %s470_s9, 2  ;;  %s87_s20 = sand.u32 1, %s466_s8  }
   0xe   : > { %p542_p11 = por %p61_p7, %p31_p0  ;;  %p546_p12 = por %p67_p8, %p37_p3 }
   0xf   : > { %s318_s21 = sshll.u32 %s470_s9, 10  ;;  %s307_s22 = sshll.u32 %s87_s20, 4 }
  0x10   : > { %s667_s18 = scalar_select %p542_p11, 1, 0 }
  0x11   : > { %s668_s19 = scalar_select %p546_p12, 1, 0 }
  0x12   : > { %s555_s25 = scalar_lea.hbm %s662_s0, %s318_s21  ;;  %s91_s26 = scalar_lea.vmem [#allocation3], %s307_s22 }
  0x13   : > { %s98_s27 = sshll.u32 %s91_s26, 4  ;;  %p559_p13 = pnand %p332_p10, %p531_p5  ;;  %s563_s27 = int_to_ptr.vmem [resolvable:$true] %s98_s27 }
  0x14   : > { %s565_s29 = scalar_lea.sflag [#allocation4], %s87_s20  ;;  %s374_s30 = scalar_lea.hbm %s555_s25, 256 }
  0x15   : > { %p375_p0 = scmp.ne.s32.totalorder %s555_s25, %s374_s30  ;;  %p376_p1 = pneg %p559_p13 }
  0x16   : > { %s379_s4 = scalar_lea.hbm %s662_s0, 2048  ;;  %p380_p4 = scmp.lt.u32.totalorder %s555_s25, %s662_s0 }
  0x17   : > { %p377_p2 = pnand %p376_p1, %p375_p0  ;;  %p381_p5 = scmp.lt.u32.totalorder %s379_s4, %s374_s30 }
  0x18   : > { %p383_p8 = scmp.lt.u32.totalorder %s374_s30, %s555_s25 }
  0x19   : > { %p378_p3 = pneg %p377_p2  ;;  %p382_p7 = por %p381_p5, %p380_p4 }
  0x1b   : > { %p384_p10 = por %p383_p8, %p382_p7 }
  0x1d   : > { %p385_p9 = pnand %p384_p10, %p378_p3 }
  0x1f   : > { %388 = shalt.err (!%p385_p9)
}
  0x20   : > { %s389_s13 = scalar_lea.vmem %s563_s27, 256  ;;  %s472_s14 = smov [#allocation3]  }
  0x21   : > { %p390_p0 = scmp.ne.s32.totalorder %s563_s27, %s389_s13  ;;  %s394_s16 = sshll.u32 %s472_s14, 4  ;;  %s395_s16 = int_to_ptr.vmem [resolvable:$false] %s394_s16 }
  0x22   : > { %s396_s20 = scalar_lea.vmem %s395_s16, 512  ;;  %p397_p11 = scmp.lt.s32.totalorder %s563_s27, %s395_s16 }
  0x23   : > { %p392_p2 = pnand %p390_p0, %p376_p1  ;;  %p398_p4 = scmp.lt.s32.totalorder %s396_s20, %s389_s13 }
  0x25   : > { %p393_p12 = pneg %p392_p2  ;;  %p399_p5 = por %p398_p4, %p397_p11 }
  0x27   : > { %p400_p7 = pnand %p399_p5, %p393_p12 }
  0x29   : > { %403 = shalt.err (!%p400_p7)
}
  0x2a   : > { %s473_s21 = smov 128   ;;  %s474_s22 = smov 8  }
  0x2b   : > { %327 = dma.hbm_to_vmem [thread:$0]  (!%p559_p13), %s555_s25, 256, %s563_s27, %s565_s29, %s473_s21, %s473_s21, %s474_s22  }
  0x2c   : > { %p310_p9 = scmp.ge.s32.totalorder %s470_s9, 1  ;;  %p106_p1 = scmp.lt.s32.totalorder %s470_s9, 3 }
  0x2e   : > { %p107_p3 = pnand %p310_p9, %p106_p1 }
  0x2f   : > { %s596_s23 = sand.u32 (!%p107_p3), 1, %s462_s7  }
  0x30   : > { %110 = sbr.rel (%p107_p3) target bundleno = 333 (0x14d), region = 24  ;;  %s311_s24 = sshll.u32 (!%p107_p3), %s596_s23, 4 }
  0x31   : > { %s113_s26 = scalar_lea.sflag (!%p107_p3), [#allocation4], %s596_s23  ;;  %s116_s30 = scalar_lea.vmem (!%p107_p3), [#allocation3], %s311_s24 }
  0x37   : > { %449 = dma.done.wait (%p535_p6), %s113_s26, 256  }
  0x38   : > { %451 = vsyncadd (%p535_p6), %s113_s26, 4294967040  ;;  %vm135_vm0 = vcmask 139264   ;;  %vm138_vm1 = vcmask 7168   ;;  %vm143_vm2 = vcmask 146568   ;;  %v475_v0 = vmov 0.0   ;;  %v148_v1 = vld [vmem:[%s116_s30] sm:$0xff] }
  0x39   : > { %136 = vst.msk [vmem:[#allocation2] sm:$0x1] %vm135_vm0, %v475_v0  ;;  %137 = vst.msk [vmem:[#allocation2 + $0x11] sm:$0x1] %vm135_vm0, %v475_v0  ;;  %vm141_vm3 = vcmask 1024   ;;  %vm146_vm4 = vcmask 140424  }
  0x3a   : > { %140 = vst.msk [vmem:[#allocation2 + $0x8] sm:$0xff] %vm138_vm1, %v475_v0  ;;  %139 = vst.msk [vmem:[#allocation2] sm:$0xff] %vm138_vm1, %v475_v0  ;;  %s476_s25 = smov 1   ;;  %v149_v2 = vld [vmem:[%s116_s30 + $0x8] sm:$0xff]  ;;  %vm158_vm5 = vcmask 138248   ;;  %s477_s17 = smov 127  }
  0x3b   : > { %145 = vst.msk [vmem:[#allocation2 + $0x8] sm:$0xff] %vm143_vm2, %v475_v0  ;;  %144 = vst.msk [vmem:[#allocation2] sm:$0xff] %vm143_vm2, %v475_v0  ;;  %152 = vrot.lane.b32.xlu0 %v148_v1, %s476_s25  ;;  %s478_s27 = smov 126   ;;  %vm194_vm6 = vcmask 1046528   ;;  %vm204_vm7 = vcmask 1045504   ;;  %vm214_vm8 = vcmask 130048  }
  0x3c   : > { %142 = vst.msk [vmem:[#allocation2 + $0x10] sm:$0x3] %vm141_vm3, %v475_v0  ;;  %s319_s28 = sshll.u32 %s513_s10, 8  ;;  %s134_s29 = scalar_lea.vmem [#allocation6], %s311_s24 }
  0x3d   : > { %147 = vst.msk [vmem:[#allocation2 + $0x10] sm:$0x3] %vm146_vm4, %v475_v0  ;;  %s231_s2 = sshll.u32 %s134_s29, 4  ;;  %s616_s5 = scalar_lea.hbm %s663_s1, %s319_s28  ;;  %s618_s2 = int_to_ptr.vmem [resolvable:$true] %s231_s2 }
  0x3e   : > { %s218_s10 = scalar_lea.sflag [#allocation5], %s596_s23  ;;  %s404_s11 = scalar_lea.vmem %s618_s2, 256 }
  0x3f   : > { %154 = vrot.lane.b32.xlu0 %v149_v2, %s476_s25  ;;  %p405_p6 = scmp.ne.s32.totalorder %s618_s2, %s404_s11  ;;  %p670_p11 = scmp.ne.s32.totalorder %s667_s18, 0 }
  0x40   : > { %s479_s13 = smov [#allocation6]  }
  0x41   : > { %p406_p12 = pnand %p405_p6, %p670_p11  ;;  %s408_s14 = sshll.u32 %s479_s13, 4  ;;  %s409_s14 = int_to_ptr.vmem [resolvable:$false] %s408_s14 }
  0x42   : > { %s410_s16 = scalar_lea.vmem %s409_s14, 512  ;;  %p411_p8 = scmp.lt.s32.totalorder %s618_s2, %s409_s14 }
  0x43   : > { %p407_p13 = pneg %p406_p12  ;;  %p412_p10 = scmp.lt.s32.totalorder %s410_s16, %s404_s11 }
  0x45   : > { %p413_p0 = por %p412_p10, %p411_p8 }
  0x47   : > { %p414_p2 = pnand %p413_p0, %p407_p13 }
  0xad   : > { %v153_v3 = vpop.permute.xlu0 %152 }
  0xae   : > { %159 = vst.msk [vmem:[#allocation2 + $0x1] sm:$0xff] %vm158_vm5, %v153_v3 }
  0xb1   : > { %v155_v4 = vpop.permute.xlu0 %154 }
  0xb2   : > { %160 = vst.msk [vmem:[#allocation2 + $0x9] sm:$0xff] %vm158_vm5, %v155_v4 }
  0xb5   : > { %v161_v5 = vld [vmem:[#allocation2] sm:$0xff] }
  0xb6   : > { %167 = vrot.lane.b32.xlu1 %v161_v5, %s477_s17 }
  0xb9   : > { %v163_v6 = vld [vmem:[#allocation2 + $0x10] sm:$0x3]  ;;  %v162_v7 = vld [vmem:[#allocation2 + $0x8] sm:$0xff] }
  0xba   : > { %171 = vrot.lane.b32.xlu0 %v163_v6, %s477_s17  ;;  %169 = vrot.lane.b32.xlu1 %v162_v7, %s477_s17 }
  0xbe   : > { %181 = vrot.lane.b32.xlu0 %v162_v7, %s478_s27  ;;  %179 = vrot.lane.b32.xlu1 %v161_v5, %s478_s27 }
  0xc2   : > { %183 = vrot.lane.b32.xlu1 %v163_v6, %s478_s27 }
 0x128   : > { %v168_v8 = vpop.permute.xlu1 %167 }
 0x129   : > { %v176_v11 = vadd.f32 %v168_v8, %v161_v5 }
 0x12c   : > { %v172_v9 = vpop.permute.xlu0 %171  ;;  %v170_v10 = vpop.permute.xlu1 %169 }
 0x12d   : > { %v177_v12 = vadd.f32 %v170_v10, %v162_v7  ;;  %v178_v17 = vadd.f32 %v172_v9, %v163_v6 }
 0x130   : > { %v182_v13 = vpop.permute.xlu0 %181  ;;  %v180_v14 = vpop.permute.xlu1 %179 }
 0x131   : > { %v189_v15 = vadd.f32 %v182_v13, %v177_v12  ;;  %v188_v16 = vadd.f32 %v180_v14, %v176_v11 }
 0x133   : > { %v196_v18 = vrot.slane %v189_v15, 1  ;;  %v206_v19 = vrot.slane %v189_v15, 2  ;;  %v195_v20 = vrot.slane %v188_v16, 1  ;;  %v205_v21 = vrot.slane %v188_v16, 2 }
 0x134   : > { %v184_v22 = vpop.permute.xlu1 %183 }
 0x135   : > { %v197_v23 = vsel %vm194_vm6, %v195_v20, %v196_v18  ;;  %v190_v24 = vadd.f32 %v184_v22, %v178_v17  ;;  %v207_v26 = vsel %vm204_vm7, %v205_v21, %v206_v19 }
 0x136   : > { %v202_v25 = vadd.f32 %v197_v23, %v188_v16 }
 0x137   : > { %v198_v27 = vrot.slane %v190_v24, 1  ;;  %v208_v28 = vrot.slane %v190_v24, 2 }
 0x138   : > { %v212_v29 = vadd.f32 %v207_v26, %v202_v25 }
 0x139   : > { %v199_v30 = vsel %vm194_vm6, %v196_v18, %v198_v27  ;;  %v209_v32 = vsel %vm204_vm7, %v206_v19, %v208_v28 }
 0x13a   : > { %215 = vst.msk [vmem:[%s134_s29] sm:$0xff] %vm214_vm8, %v212_v29  ;;  %v203_v31 = vadd.f32 %v199_v30, %v189_v15 }
 0x13c   : > { %v213_v33 = vadd.f32 %v209_v32, %v203_v31 }
 0x13e   : > { %216 = vst.msk [vmem:[%s134_s29 + $0x8] sm:$0xff] %vm214_vm8, %v213_v33 }
 0x13f   : > { %417 = shalt.err (!%p414_p2)
}
 0x140   : > { %s418_s20 = scalar_lea.hbm %s616_s5, 256  ;;  %s422_s24 = scalar_lea.hbm %s663_s1, 512 }
 0x141   : > { %p419_p4 = scmp.ne.s32.totalorder %s616_s5, %s418_s20  ;;  %p423_p9 = scmp.lt.u32.totalorder %s616_s5, %s663_s1 }
 0x142   : > { %p424_p1 = scmp.lt.u32.totalorder %s422_s24, %s418_s20  ;;  %p426_p6 = scmp.lt.u32.totalorder %s418_s20, %s616_s5 }
 0x143   : > { %p420_p5 = pnand %p419_p4, %p670_p11 }
 0x144   : > { %p425_p3 = por %p424_p1, %p423_p9 }
 0x145   : > { %p421_p7 = pneg %p420_p5 }
 0x146   : > { %p427_p12 = por %p426_p6, %p425_p3 }
 0x148   : > { %p428_p13 = pnand %p427_p12, %p421_p7 }
 0x14a   : > { %431 = shalt.err (!%p428_p13)
}
 0x14b   : > { %s480_s25 = smov 128   ;;  %s481_s17 = smov 8  }
 0x14c   : > { %322 = dma.vmem_to_hbm [thread:$0]  (%p670_p11), %s618_s2, 256, %s616_s5, %s218_s10, %s480_s25, %s480_s25, %s481_s17  }
 0x14d PF: > { %s246_s27 = sand.u32 1, %s458_s6   ;;  %p671_p8 = scmp.ne.s32.totalorder %s668_s19, 0 }
 0x14e   : > { %p672_p10 = scmp.ge.s32.totalorder %s470_s9, 2  ;;  %s247_s28 = scalar_lea.sflag [#allocation5], %s246_s27 }
 0x150   : > { %p329_p0 = pnand %p672_p10, %p671_p8 }
 0x152   : > { %453 = dma.done.wait (!%p329_p0), %s247_s28, 256  }
 0x153   : > { %455 = vsyncadd (!%p329_p0), %s247_s28, 4294967040  ;;  %p14_p2 = scmp.ge.s32.totalorder %s517_s12, 4   ;;  %s673_s6 = smov %s462_s7 }
 0x154   : > { %s674_s7 = smov %s466_s8  ;;  %s675_s8 = smov %s529_s15 }
 0x155   : > { %s676_s9 = smov %s517_s12  ;;  %16 = sbr.rel (!%p14_p2) target bundleno = 5 (0x5), region = 69 }
 0x15c   :  { %252 = vsyncpa [#allocation4], 1 }
 0x15d   :  { %254 = vsyncpa [#allocation4 + $0x1], 1 }
 0x15e   :  { %255 = vsyncpa [#allocation5], 1 }
 0x15f   :  { %257 = vsyncpa [#allocation5 + $0x1], 1 }

</bundles_post_ra>
